<compile_context>
chip_gen: v6e
topology: v6e:2x2x1
jax: 0.10.0
libtpu: 0.0.40
codegen_flags: <defaults>
</compile_context>

<pallas_src>
import functools

import jax
import jax.numpy as jnp
from jax import lax
from jax.experimental import pallas as pl
from jax.experimental.pallas import tpu as pltpu

_LANE = 128
_SUBLANE = 8


def _round_up(x: int, m: int) -> int:
    return (x + m - 1) // m * m


def _actor_kernel(x_ref, w1_ref, b1_ref, w2_ref, b2_ref, probs_ref, *, out_dim):
    # hidden = relu(x @ W1 + b1)   (padded lanes of W1/b1 are zero -> h pad = 0)
    x = x_ref[...]
    h = jnp.dot(x, w1_ref[...], preferred_element_type=jnp.float32) + b1_ref[...]
    h = jnp.maximum(h, 0.0)

    # logits = h @ W2 + b2         (padded rows of W2 are zero -> no contribution)
    logits = jnp.dot(h, w2_ref[...], preferred_element_type=jnp.float32) + b2_ref[...]

    # Mask padded output lanes so they vanish under softmax.
    lane = lax.broadcasted_iota(jnp.int32, logits.shape, dimension=1)
    logits = jnp.where(lane < out_dim, logits, jnp.float32(-1e30))

    # Numerically-stable softmax over the last axis (matches torch.softmax(dim=-1)).
    m = jnp.max(logits, axis=-1, keepdims=True)
    e = jnp.exp(logits - m)
    denom = jnp.sum(e, axis=-1, keepdims=True)
    probs_ref[...] = (e * pl.reciprocal(denom, approx=False)).astype(probs_ref.dtype)


def categorical_actor_forward(x, w1, b1, w2, b2, *, batch_tile=256):
    """forward(x) = softmax(relu(x @ W1 + b1) @ W2 + b2, axis=-1)."""
    batch, input_dim = x.shape
    hidden_dim = w1.shape[1]
    out_dim = w2.shape[1]

    # Lane-align every feature dim; sublane-align the batch tile.
    in_p = _round_up(input_dim, _LANE)
    hid_p = _round_up(hidden_dim, _LANE)
    out_p = _round_up(out_dim, _LANE)
    tb = min(batch_tile, _round_up(batch, _SUBLANE))
    batch_p = _round_up(batch, tb)

    # Zero-pad once in the wrapper (weights would normally be padded offline).
    xp = jnp.zeros((batch_p, in_p), jnp.float32).at[:batch, :input_dim].set(x)
    w1p = jnp.zeros((in_p, hid_p), jnp.float32).at[:input_dim, :hidden_dim].set(w1)
    b1p = jnp.zeros((1, hid_p), jnp.float32).at[:, :hidden_dim].set(b1.reshape(1, -1))
    w2p = jnp.zeros((hid_p, out_p), jnp.float32).at[:hidden_dim, :out_dim].set(w2)
    b2p = jnp.zeros((1, out_p), jnp.float32).at[:, :out_dim].set(b2.reshape(1, -1))

    kernel = functools.partial(_actor_kernel, out_dim=out_dim)

    probs_padded = pl.pallas_call(
        kernel,
        out_shape=jax.ShapeDtypeStruct((batch_p, out_p), jnp.float32),
        grid_spec=pltpu.PrefetchScalarGridSpec(
            num_scalar_prefetch=0,
            grid=(batch_p // tb,),
            in_specs=[
                # Batch-tiled activations.
                pl.BlockSpec((tb, in_p), lambda i: (i, 0)),
                # Weights / biases resident across all batch tiles.
                pl.BlockSpec((in_p, hid_p), lambda i: (0, 0)),
                pl.BlockSpec((1, hid_p), lambda i: (0, 0)),
                pl.BlockSpec((hid_p, out_p), lambda i: (0, 0)),
                pl.BlockSpec((1, out_p), lambda i: (0, 0)),
            ],
            out_specs=pl.BlockSpec((tb, out_p), lambda i: (i, 0)),
        ),
        compiler_params=pltpu.CompilerParams(
            dimension_semantics=("parallel",),
        ),
    )(xp, w1p, b1p, w2p, b2p)

    return probs_padded[:batch, :out_dim]


def reference_forward(x, w1, b1, w2, b2):
    h = jnp.maximum(x @ w1 + b1, 0.0)
    logits = h @ w2 + b2
    return jax.nn.softmax(logits, axis=-1)


def _make_params(key, input_dim, hidden_dim, output_dim):
    k1, k2, k3, k4 = jax.random.split(key, 4)
    bound1 = 1.0 / jnp.sqrt(input_dim)
    w1 = jax.random.uniform(k1, (input_dim, hidden_dim), jnp.float32, -bound1, bound1)
    b1 = jax.random.uniform(k2, (1, hidden_dim), jnp.float32, -bound1, bound1)
    bound2 = 1.0 / jnp.sqrt(hidden_dim)
    w2 = jax.random.uniform(k3, (hidden_dim, output_dim), jnp.float32, -bound2, bound2)
    b2 = jax.random.uniform(k4, (1, output_dim), jnp.float32, -bound2, bound2)
    return w1, b1, w2, b2


if __name__ == "__main__":
    input_dim, hidden_dim, output_dim = 16, 32, 6

    key = jax.random.PRNGKey(0)
    kp, kx_small, kx_big = jax.random.split(key, 3)
    w1, b1, w2, b2 = _make_params(kp, input_dim, hidden_dim, output_dim)

    # 1) Small shapes consistent with the module: batch=4 states of dim 16,
    #    one hidden layer of 32, 6 discrete actions (single grid step).
    x_small = jax.random.normal(kx_small, (4, input_dim), dtype=jnp.float32)
    probs = jax.block_until_ready(categorical_actor_forward(x_small, w1, b1, w2, b2))
    ref = reference_forward(x_small, w1, b1, w2, b2)
    assert probs.shape == (4, output_dim)
    assert jnp.allclose(probs, ref, atol=1e-5, rtol=1e-5)
    assert jnp.allclose(jnp.sum(probs, axis=-1), 1.0, atol=1e-5)

    # 2) Larger batch to exercise the multi-step "parallel" batch grid
    #    (2 tiles of 256 rows -> shards across v7x's 2 TensorCores).
    x_big = jax.random.normal(kx_big, (512, input_dim), dtype=jnp.float32)
    probs_big = jax.block_until_ready(categorical_actor_forward(x_big, w1, b1, w2, b2))
    ref_big = reference_forward(x_big, w1, b1, w2, b2)
    assert probs_big.shape == (512, output_dim)
    assert jnp.allclose(probs_big, ref_big, atol=1e-5, rtol=1e-5)
    assert jnp.allclose(jnp.sum(probs_big, axis=-1), 1.0, atol=1e-5)

    # TODO(synk): sample()/evaluate() require Categorical sampling / log_prob,
    # which stay in plain JAX (not part of the forward hot path).
    print("KERNEL_OK")
</pallas_src>

<mosaic_0001>
module attributes {stable_mosaic.version = 11 : i64} {
  func.func @_actor_kernel(%arg0: i32, %arg1: memref<8x128xf32, #tpu.memory_space<vmem>>, %arg2: memref<128x128xf32, #tpu.memory_space<vmem>>, %arg3: memref<1x128xf32, #tpu.memory_space<vmem>>, %arg4: memref<128x128xf32, #tpu.memory_space<vmem>>, %arg5: memref<1x128xf32, #tpu.memory_space<vmem>>, %arg6: memref<8x128xf32, #tpu.memory_space<vmem>>) attributes {dimension_semantics = [#tpu.dimension_semantics<parallel>], iteration_bounds = array<i64: 1>, scalar_prefetch = 0 : i64, scratch_operands = 0 : i64, tpu.core_type = #tpu.core_type<tc>, window_params = [{transform_indices = @transform_0, window_bounds = array<i64: 8, 128>}, {pipeline_mode = #tpu.pipeline_mode<synchronous>, transform_indices = @transform_1, window_bounds = array<i64: 128, 128>}, {pipeline_mode = #tpu.pipeline_mode<synchronous>, transform_indices = @transform_2, window_bounds = array<i64: 1, 128>}, {pipeline_mode = #tpu.pipeline_mode<synchronous>, transform_indices = @transform_3, window_bounds = array<i64: 128, 128>}, {pipeline_mode = #tpu.pipeline_mode<synchronous>, transform_indices = @transform_4, window_bounds = array<i64: 1, 128>}, {transform_indices = @transform_5, window_bounds = array<i64: 8, 128>}]} {
    %c0 = arith.constant 0 : index
    %c0_0 = arith.constant 0 : index
    %0 = vector.load %arg1[%c0, %c0_0] : memref<8x128xf32, #tpu.memory_space<vmem>>, vector<8x128xf32>
    %c0_1 = arith.constant 0 : index
    %c0_2 = arith.constant 0 : index
    %1 = vector.load %arg2[%c0_1, %c0_2] : memref<128x128xf32, #tpu.memory_space<vmem>>, vector<128x128xf32>
    %cst = arith.constant dense<0.000000e+00> : vector<8x128xf32>
    %2 = tpu.matmul %0, %1, %cst {dimension_numbers = #tpu.dot_dimension_numbers<[1], [0], [0], [1], [0, 0, 1, 1], [], []>} : vector<8x128xf32>, vector<128x128xf32>, vector<8x128xf32> -> vector<8x128xf32>
    %c0_3 = arith.constant 0 : index
    %c0_4 = arith.constant 0 : index
    %3 = vector.load %arg3[%c0_3, %c0_4] : memref<1x128xf32, #tpu.memory_space<vmem>>, vector<1x128xf32>
    %4 = vector.broadcast %3 : vector<1x128xf32> to vector<8x128xf32>
    %5 = arith.addf %2, %4 : vector<8x128xf32>
    %cst_5 = arith.constant 0.000000e+00 : f32
    %6 = vector.broadcast %cst_5 : f32 to vector<8x128xf32>
    %7 = arith.maximumf %5, %6 : vector<8x128xf32>
    %c0_6 = arith.constant 0 : index
    %c0_7 = arith.constant 0 : index
    %8 = vector.load %arg4[%c0_6, %c0_7] : memref<128x128xf32, #tpu.memory_space<vmem>>, vector<128x128xf32>
    %cst_8 = arith.constant dense<0.000000e+00> : vector<8x128xf32>
    %9 = tpu.matmul %7, %8, %cst_8 {dimension_numbers = #tpu.dot_dimension_numbers<[1], [0], [0], [1], [0, 0, 1, 1], [], []>} : vector<8x128xf32>, vector<128x128xf32>, vector<8x128xf32> -> vector<8x128xf32>
    %c0_9 = arith.constant 0 : index
    %c0_10 = arith.constant 0 : index
    %10 = vector.load %arg5[%c0_9, %c0_10] : memref<1x128xf32, #tpu.memory_space<vmem>>, vector<1x128xf32>
    %11 = vector.broadcast %10 : vector<1x128xf32> to vector<8x128xf32>
    %12 = arith.addf %9, %11 : vector<8x128xf32>
    %13 = tpu.iota {dimensions = array<i32: 1>} : vector<8x128xi32>
    %c6_i32 = arith.constant 6 : i32
    %14 = vector.broadcast %c6_i32 : i32 to vector<8x128xi32>
    %15 = arith.cmpi slt, %13, %14 : vector<8x128xi32>
    %cst_11 = arith.constant -1.000000e+30 : f32
    %16 = vector.broadcast %cst_11 : f32 to vector<8x128xf32>
    %17 = arith.select %15, %12, %16 : vector<8x128xi1>, vector<8x128xf32>
    %cst_12 = arith.constant dense<0xFF800000> : vector<8xf32>
    %18 = vector.multi_reduction <maximumf>, %17, %cst_12 [1] : vector<8x128xf32> to vector<8xf32>
    %19 = vector.shape_cast %18 : vector<8xf32> to vector<8x1xf32>
    %20 = vector.broadcast %19 : vector<8x1xf32> to vector<8x128xf32>
    %21 = arith.subf %17, %20 : vector<8x128xf32>
    %22 = math.exp %21 : vector<8x128xf32>
    %cst_13 = arith.constant dense<0.000000e+00> : vector<8xf32>
    %23 = vector.multi_reduction <add>, %22, %cst_13 [1] : vector<8x128xf32> to vector<8xf32>
    %24 = vector.shape_cast %23 : vector<8xf32> to vector<8x1xf32>
    %25 = tpu.reciprocal %24 : vector<8x1xf32> -> vector<8x1xf32>
    %26 = vector.broadcast %25 : vector<8x1xf32> to vector<8x128xf32>
    %27 = arith.mulf %22, %26 : vector<8x128xf32>
    %c0_14 = arith.constant 0 : index
    %c0_15 = arith.constant 0 : index
    %28 = vector.load %arg6[%c0_14, %c0_15] : memref<8x128xf32, #tpu.memory_space<vmem>>, vector<8x128xf32>
    tpu.vector_store %arg6[%c0_14, %c0_15], %27 {strides = array<i32>} : memref<8x128xf32, #tpu.memory_space<vmem>>, vector<8x128xf32>,
    return
  }
  func.func @transform_0(%arg0: i32) -> (i32, i32) {
    %c0_i32 = arith.constant 0 : i32
    %c0_i32_0 = arith.constant 0 : i32
    return %arg0, %c0_i32 : i32, i32
  }
  func.func @transform_1(%arg0: i32) -> (i32, i32) {
    %c0_i32 = arith.constant 0 : i32
    %c0_i32_0 = arith.constant 0 : i32
    %c0_i32_1 = arith.constant 0 : i32
    return %c0_i32, %c0_i32_0 : i32, i32
  }
  func.func @transform_2(%arg0: i32) -> (i32, i32) {
    %c0_i32 = arith.constant 0 : i32
    %c0_i32_0 = arith.constant 0 : i32
    %c0_i32_1 = arith.constant 0 : i32
    return %c0_i32, %c0_i32_0 : i32, i32
  }
  func.func @transform_3(%arg0: i32) -> (i32, i32) {
    %c0_i32 = arith.constant 0 : i32
    %c0_i32_0 = arith.constant 0 : i32
    %c0_i32_1 = arith.constant 0 : i32
    return %c0_i32, %c0_i32_0 : i32, i32
  }
  func.func @transform_4(%arg0: i32) -> (i32, i32) {
    %c0_i32 = arith.constant 0 : i32
    %c0_i32_0 = arith.constant 0 : i32
    %c0_i32_1 = arith.constant 0 : i32
    return %c0_i32, %c0_i32_0 : i32, i32
  }
  func.func @transform_5(%arg0: i32) -> (i32, i32) {
    %c0_i32 = arith.constant 0 : i32
    %c0_i32_0 = arith.constant 0 : i32
    return %arg0, %c0_i32 : i32, i32
  }
}

</mosaic_0001>

<bundles_post_ra>
// kernel: tpu_custom_call.1
= control target key start
LH: loop header
LB: loop body
LE: loop exit
PB: predicated region body
PF: predicated region fallthrough
CT: control target
= control target key end

     0   :  { %10 = vsyncpa [#allocation3], 0  ;;  %s572_s0 = inlined_call_operand.hbm [shape: f32[8,128], index: 0, kind: input, shape index: {}]   ;;  %s573_s1 = inlined_call_operand.hbm [shape: f32[128,128], index: 1, kind: input, shape index: {}]   ;;  %s574_s2 = inlined_call_operand.vmem [shape: f32[1,128], index: 2, kind: input, shape index: {}]   ;;  %s575_s3 = inlined_call_operand.hbm [shape: f32[128,128], index: 3, kind: input, shape index: {}]   ;;  %s576_s4 = inlined_call_operand.vmem [shape: f32[1,128], index: 4, kind: input, shape index: {}]   ;;  %s577_s5 = inlined_call_operand.hbm [shape: f32[8,128], index: 5, kind: output, shape index: {}]  }
   0x1   :  { %11 = vsyncpa [#allocation6], 0 }
   0x2   :  { %12 = vsyncpa [#allocation4], 0  ;;  %s482_s18 = smov [#allocation5]  }
   0x3   :  { %s28_s19 = sshll.u32 %s482_s18, 4  ;;  %s29_s19 = int_to_ptr.vmem [resolvable:$true] %s28_s19 }
   0x4   :  { %s404_s20 = scalar_lea.vmem %s29_s19, 2048  ;;  %p409_p1 = scmp.lt.s32.totalorder %s29_s19, %s29_s19 }
   0x5   :  { %p405_p0 = scmp.ne.s32.totalorder %s29_s19, %s404_s20  ;;  %p410_p2 = scmp.lt.s32.totalorder %s404_s20, %s404_s20 }
   0x7   :  { %p411_p3 = por %p410_p2, %p409_p1 }
   0x9   :  { %p412_p4 = pnand %p411_p3, %p405_p0 }
   0xb   :  { %415 = shalt.err (!%p412_p4)
}
   0xc   :  { %s483_s21 = smov 128   ;;  %s484_s22 = smov 8  }
   0xd   :  { %34 = dma.hbm_to_vmem [thread:$0]  %s573_s1, 2048, %s29_s19, [#allocation6], %s483_s21, %s483_s21, %s484_s22  }
   0xe   :  { %s485_s25 = smov [#allocation2]   ;;  %s486_s27 = smov [#allocation7]  }
   0xf   :  { %s19_s26 = sshll.u32 %s485_s25, 4  ;;  %s42_s28 = sshll.u32 %s486_s27, 4  ;;  %s20_s26 = int_to_ptr.vmem [resolvable:$true] %s19_s26  ;;  %s43_s28 = int_to_ptr.vmem [resolvable:$true] %s42_s28 }
  0x10   :  { %s424_s29 = scalar_lea.vmem %s20_s26, 128  ;;  %p429_p6 = scmp.lt.s32.totalorder %s20_s26, %s20_s26 }
  0x11   :  { %p425_p5 = scmp.ne.s32.totalorder %s20_s26, %s424_s29  ;;  %p430_p7 = scmp.lt.s32.totalorder %s424_s29, %s424_s29 }
  0x13   :  { %p431_p8 = por %p430_p7, %p429_p6 }
  0x15   :  { %p432_p9 = pnand %p431_p8, %p425_p5 }
  0x17   :  { %435 = shalt.err (!%p432_p9)
}
  0x18   :  { %22 = dma.hbm_to_vmem [thread:$0]  %s572_s0, 128, %s20_s26, [#allocation3]  }
  0x19   :  { %s444_s7 = scalar_lea.vmem %s43_s28, 2048  ;;  %p449_p11 = scmp.lt.s32.totalorder %s43_s28, %s43_s28 }
  0x1a   :  { %p445_p10 = scmp.ne.s32.totalorder %s43_s28, %s444_s7  ;;  %p450_p12 = scmp.lt.s32.totalorder %s444_s7, %s444_s7 }
  0x1c   :  { %p451_p13 = por %p450_p12, %p449_p11 }
  0x1e   :  { %p452_p0 = pnand %p451_p13, %p445_p10 }
  0x20   :  { %455 = shalt.err (!%p452_p0)
}
  0x21   :  { %48 = dma.hbm_to_vmem [thread:$0]  %s575_s3, 2048, %s43_s28, [#allocation6], %s483_s21, %s483_s21, %s484_s22  }
  0x22   :  { %476 = dma.done.wait [#allocation3], 128  }
  0x23   :  { %477 = vsyncadd [#allocation3], 4294967168 }
  0x24   :  { %478 = dma.done.wait [#allocation6], 4096  }
  0x25   :  { %479 = vsyncadd [#allocation6], 4294963200  ;;  %v487_v0 = vmov 0.0   ;;  %vm488_vm0 = vmmov 0   ;;  %v76_v1 = vld [vmem:[#allocation5 + $0x78] sm:$0xff]  ;;  %v75_v2 = vld [vmem:[#allocation5 + $0x70] sm:$0xff]  ;;  %v248_v39 = vlaneseq }
  0x26   :  { %314 = vmatprep.subr.mxu0 %v487_v0  ;;  %346 = vmatprep.mubr.msk.f32.mxu0 %vm488_vm0, %v487_v0  ;;  %v74_v3 = vld [vmem:[#allocation5 + $0x68] sm:$0xff]  ;;  %v73_v4 = vld [vmem:[#allocation5 + $0x60] sm:$0xff]  ;;  %v170_v5 = vld [vmem:[#allocation7 + $0x78] sm:$0xff] }
  0x27   :  { %349 = vmatprep.subr.mxu1 %v487_v0  ;;  %381 = vmatprep.mubr.msk.f32.mxu1 %vm488_vm0, %v487_v0  ;;  %v72_v6 = vld [vmem:[#allocation5 + $0x58] sm:$0xff]  ;;  %v169_v7 = vld [vmem:[#allocation7 + $0x70] sm:$0xff]  ;;  %v168_v8 = vld [vmem:[#allocation7 + $0x68] sm:$0xff]  ;;  %v249_v40 = vand.u32 127, %v248_v39 }
  0x28   :  { %315 = vmatpush3.msra.mxu0 %v76_v1  ;;  %350 = vmatpush3.msra.mxu1 %v170_v5  ;;  %v71_v9 = vld [vmem:[#allocation5 + $0x50] sm:$0xff]  ;;  %v167_v10 = vld [vmem:[#allocation7 + $0x60] sm:$0xff]  ;;  %v70_v11 = vld [vmem:[#allocation5 + $0x48] sm:$0xff] }
  0x29   :  { %316 = vmatprep.subr.mxu0 %v487_v0  ;;  %351 = vmatprep.subr.mxu1 %v487_v0  ;;  %v166_v12 = vld [vmem:[#allocation7 + $0x58] sm:$0xff]  ;;  %v69_v13 = vld [vmem:[#allocation5 + $0x40] sm:$0xff]  ;;  %v165_v14 = vld [vmem:[#allocation7 + $0x50] sm:$0xff]  ;;  %vm250_vm1 = vcmp.lt.s32.totalorder %v249_v40, 6 }
  0x2a   :  { %317 = vmatpush3.msra.mxu0 %v75_v2  ;;  %352 = vmatpush3.msra.mxu1 %v169_v7  ;;  %v68_v15 = vld [vmem:[#allocation5 + $0x38] sm:$0xff]  ;;  %v164_v16 = vld [vmem:[#allocation7 + $0x48] sm:$0xff]  ;;  %v67_v17 = vld [vmem:[#allocation5 + $0x30] sm:$0xff] }
  0x2b   :  { %318 = vmatprep.subr.mxu0 %v487_v0  ;;  %353 = vmatprep.subr.mxu1 %v487_v0  ;;  %v163_v18 = vld [vmem:[#allocation7 + $0x40] sm:$0xff]  ;;  %v66_v19 = vld [vmem:[#allocation5 + $0x28] sm:$0xff]  ;;  %v162_v20 = vld [vmem:[#allocation7 + $0x38] sm:$0xff] }
  0x2c   :  { %319 = vmatpush3.msra.mxu0 %v74_v3  ;;  %354 = vmatpush3.msra.mxu1 %v168_v8  ;;  %v65_v21 = vld [vmem:[#allocation5 + $0x20] sm:$0xff]  ;;  %v161_v22 = vld [vmem:[#allocation7 + $0x30] sm:$0xff]  ;;  %v64_v23 = vld [vmem:[#allocation5 + $0x18] sm:$0xff] }
  0x2d   :  { %320 = vmatprep.subr.mxu0 %v487_v0  ;;  %355 = vmatprep.subr.mxu1 %v487_v0  ;;  %v160_v24 = vld [vmem:[#allocation7 + $0x28] sm:$0xff]  ;;  %v63_v25 = vld [vmem:[#allocation5 + $0x10] sm:$0xff]  ;;  %v159_v26 = vld [vmem:[#allocation7 + $0x20] sm:$0xff] }
  0x2e   :  { %321 = vmatpush3.msra.mxu0 %v73_v4  ;;  %356 = vmatpush3.msra.mxu1 %v167_v10  ;;  %v62_v27 = vld [vmem:[#allocation5 + $0x8] sm:$0xff]  ;;  %v158_v28 = vld [vmem:[#allocation7 + $0x18] sm:$0xff]  ;;  %v61_v29 = vld [vmem:[#allocation5] sm:$0xff] }
  0x2f   :  { %322 = vmatprep.subr.mxu0 %v487_v0  ;;  %357 = vmatprep.subr.mxu1 %v487_v0  ;;  %v60_v30 = vld [vmem:[#allocation2] sm:$0xff]  ;;  %v157_v31 = vld [vmem:[#allocation7 + $0x10] sm:$0xff]  ;;  %v156_v32 = vld [vmem:[#allocation7 + $0x8] sm:$0xff] }
  0x30   :  { %323 = vmatpush3.msra.mxu0 %v72_v6  ;;  %358 = vmatpush3.msra.mxu1 %v166_v12  ;;  %v155_v33 = vld [vmem:[#allocation7] sm:$0xff]  ;;  %v278_v34 = vld [vmem:[%s574_s2] ss:$0 sm:$0xff]  ;;  %s489_s2 = smov [#allocation8]  }
  0x31   :  { %324 = vmatprep.subr.mxu0 %v487_v0  ;;  %359 = vmatprep.subr.mxu1 %v487_v0  ;;  %v279_v41 = vld [vmem:[%s576_s4] ss:$0 sm:$0xff]  ;;  %s268_s11 = sshll.u32 %s489_s2, 4  ;;  %s269_s11 = int_to_ptr.vmem [resolvable:$true] %s268_s11 }
  0x32   :  { %325 = vmatpush3.msra.mxu0 %v71_v9  ;;  %360 = vmatpush3.msra.mxu1 %v165_v14  ;;  %s456_s4 = scalar_lea.vmem %s269_s11, 128  ;;  %p461_p2 = scmp.lt.s32.totalorder %s269_s11, %s269_s11 }
  0x33   :  { %326 = vmatprep.subr.mxu0 %v487_v0  ;;  %361 = vmatprep.subr.mxu1 %v487_v0  ;;  %p457_p1 = scmp.ne.s32.totalorder %s269_s11, %s456_s4  ;;  %p462_p3 = scmp.lt.s32.totalorder %s456_s4, %s456_s4 }
  0x34   :  { %327 = vmatpush3.msra.mxu0 %v70_v11  ;;  %362 = vmatpush3.msra.mxu1 %v164_v16 }
  0x35   :  { %328 = vmatprep.subr.mxu0 %v487_v0  ;;  %363 = vmatprep.subr.mxu1 %v487_v0  ;;  %p463_p4 = por %p462_p3, %p461_p2 }
  0x36   :  { %329 = vmatpush3.msra.mxu0 %v69_v13  ;;  %364 = vmatpush3.msra.mxu1 %v163_v18 }
  0x37   :  { %330 = vmatprep.subr.mxu0 %v487_v0  ;;  %365 = vmatprep.subr.mxu1 %v487_v0  ;;  %p464_p5 = pnand %p463_p4, %p457_p1 }
  0x38   :  { %331 = vmatpush3.msra.mxu0 %v68_v15  ;;  %366 = vmatpush3.msra.mxu1 %v162_v20 }
  0x39   :  { %332 = vmatprep.subr.mxu0 %v487_v0  ;;  %367 = vmatprep.subr.mxu1 %v487_v0 }
  0x3a   :  { %333 = vmatpush3.msra.mxu0 %v67_v17  ;;  %368 = vmatpush3.msra.mxu1 %v161_v22 }
  0x3b   :  { %334 = vmatprep.subr.mxu0 %v487_v0  ;;  %369 = vmatprep.subr.mxu1 %v487_v0 }
  0x3c   :  { %335 = vmatpush3.msra.mxu0 %v66_v19  ;;  %370 = vmatpush3.msra.mxu1 %v160_v24 }
  0x3d   :  { %336 = vmatprep.subr.mxu0 %v487_v0  ;;  %371 = vmatprep.subr.mxu1 %v487_v0 }
  0x3e   :  { %337 = vmatpush3.msra.mxu0 %v65_v21  ;;  %372 = vmatpush3.msra.mxu1 %v159_v26 }
  0x3f   :  { %338 = vmatprep.subr.mxu0 %v487_v0  ;;  %373 = vmatprep.subr.mxu1 %v487_v0 }
  0x40   :  { %339 = vmatpush3.msra.mxu0 %v64_v23  ;;  %374 = vmatpush3.msra.mxu1 %v158_v28 }
  0x41   :  { %340 = vmatprep.subr.mxu0 %v487_v0  ;;  %375 = vmatprep.subr.mxu1 %v487_v0 }
  0x42   :  { %341 = vmatpush3.msra.mxu0 %v63_v25  ;;  %376 = vmatpush3.msra.mxu1 %v157_v31 }
  0x43   :  { %342 = vmatprep.subr.mxu0 %v487_v0  ;;  %377 = vmatprep.subr.mxu1 %v487_v0 }
  0x44   :  { %343 = vmatpush3.msra.mxu0 %v62_v27  ;;  %378 = vmatpush3.msra.mxu1 %v156_v32 }
  0x45   :  { %344 = vmatprep.subr.mxu0 %v487_v0  ;;  %379 = vmatprep.subr.mxu1 %v487_v0 }
  0x46   :  { %345 = vmatpush3.msra.mxu0 %v61_v29  ;;  %380 = vmatpush3.msra.mxu1 %v155_v33 }
  0x47   :  { %347 = vmatmul.mubr.f32.vlgmr.msra.gmra.mxu0 %v60_v30 }
 0x107   :  { %v150_v35 = vpop.f32.mrf.mxu0 }
 0x108   :  { %v151_v36 = vadd.f32 %v278_v34, %v150_v35 }
 0x109   :  { %v348_v37 = vpop.f32.mrf.mxu0 }
 0x10a   :  { %v154_v38 = vmax.f32 %v151_v36, 0.0 }
 0x10c   :  { %382 = vmatmul.mubr.f32.vlgmr.msra.gmra.mxu1 %v154_v38 }
 0x1cc   :  { %v244_v42 = vpop.f32.mrf.mxu1 }
 0x1cd   :  { %v245_v43 = vadd.f32 %v279_v41, %v244_v42 }
 0x1ce   :  { %v383_v44 = vpop.f32.mrf.mxu1 }
 0x1cf   :  { %v251_v45 = vsel %vm250_vm1, %v245_v43, -1e+30 }
 0x1d0   :  { %252 = vmax.xlane.f32.xlu0 %v251_v45 }
 0x259   :  { %v253_v46 = vpop.xlane.xlu0 %252 }
 0x25a   :  { %v254_v47 = vsub.f32 %v251_v45, %v253_v46 }
 0x25c   :  { %v255_v48 = vmul.f32 1.442695, %v254_v47 }
 0x25e   :  { %392 = vpow2.f32 %v255_v48 }
 0x26b   :  { %v393_v49 = vpop.eup %392 }
 0x26c   :  { %257 = vadd.xlane.f32.xlu0 %v393_v49 }
 0x2f5   :  { %v258_v50 = vpop.xlane.xlu0 %257 }
 0x2f6   :  { %394 = vrcp.f32 %v258_v50 }
 0x303   :  { %v395_v51 = vpop.eup %394 }
 0x304   :  { %v260_v52 = vmul.f32 %v395_v51, %v393_v49 }
 0x306   :  { %261 = vst [vmem:[#allocation8] sm:$0xff] %v260_v52 }
 0x307   :  { %467 = shalt.err (!%p464_p5)
}
 0x308   :  { %271 = dma.vmem_to_hbm [thread:$0]  %s269_s11, 128, %s577_s5, [#allocation4]  }
 0x309   :  { %480 = dma.done.wait [#allocation4], 128  }
 0x30a   :  { %481 = vsyncadd [#allocation4], 4294967168 }
 0x30b   :  { %275 = vsyncpa [#allocation3], 1 }
 0x30c   :  { %276 = vsyncpa [#allocation6], 1 }
 0x30d   :  { %277 = vsyncpa [#allocation4], 1 }

</bundles_post_ra>
